<compile_context>
chip_gen: v7x
topology: tpu7x:2x2x1
jax: 0.10.0
libtpu: 0.0.40
codegen_flags: <defaults>
</compile_context>

<pallas_src>
import functools

import jax
import jax.numpy as jnp
from jax.experimental import pallas as pl
from jax.experimental.pallas import tpu as pltpu


C0 = 0.5
C1 = 0.044715
C2 = 0.7978845608028654


def _round_up(x, m):
    return ((x + m - 1) // m) * m


def _conv_gelu_kernel(x_ref, w_ref, b_ref, o_ref, *, taps, q):
    """Fused KxK conv (tap-folded single MXU dot) + bias + tanh-GELU epilogue.

    x_ref: (Cin, Q)              flattened input image, q = h*W + w
    w_ref: (Cout_pad, kh*kw*Cin) tap-folded weights
    b_ref: (Cout_pad, 1)         bias column (zero rows in the pad)
    o_ref: (Cout_pad, Q)         output in "big" pixel layout q = h*W + w
    """
    xv = x_ref[...]
    # Build the (kh*kw*Cin, Q) im2col slab with XLU lane rotations:
    #   cols[t][c, q] = x_flat[c, q + taps[t]]   (wrap only in discarded cols)
    cols = [xv if off == 0 else pltpu.roll(xv, shift=q - off, axis=1)
            for off in taps]
    x_stack = jnp.concatenate(cols, axis=0)

    # One MXU pass: K = kh*kw*Cin = 256 fills the v6e/v7x MXU contraction.
    v2 = jnp.dot(w_ref[...], x_stack,
                 preferred_element_type=jnp.float32) + b_ref[...]

    # Epilogue: 0.5*v2 * (tanh(C2*(v2 + C1*v2^3)) + 1)
    u = v2 * v2
    v8 = v2 * (C2 + (C2 * C1) * u)
    o_ref[...] = (C0 * v2) * (jnp.tanh(v8) + 1.0)


def prepare_params(w, b):
    """One-time weight/bias prep (off the per-forward hot path).

    w: (Cout, Cin, kh, kw) -> (Cout_pad, kh*kw*Cin), tap order (dh outer, dw inner)
    b: (Cout,)             -> (Cout_pad, 1)
    Cout is padded up to a multiple of 8 (31 -> 32) with zero rows.
    """
    cout, cin, kh, kw = w.shape
    cout_pad = _round_up(cout, 8)
    w_k = jnp.transpose(w, (0, 2, 3, 1)).reshape(cout, kh * kw * cin)
    w_k = jnp.pad(w_k, ((0, cout_pad - cout), (0, 0)))
    b_col = jnp.pad(b.reshape(cout, 1), ((0, cout_pad - cout), (0, 0)))
    return w_k, b_col


def make_forward(kh, kw, cout):
    """Build the jitted forward for fixed kernel size / true Cout."""

    @jax.jit
    def forward(x, w_k, b_col):
        # TODO(synk): batch N > 1 would need pixel-flattening as (Cin, N*H*W)
        # (safe by the same wrap argument) plus a host transpose; demo is N=1.
        n, cin, H, W = x.shape
        assert n == 1, "this kernel wrapper assumes batch N == 1"
        hout, wout = H - kh + 1, W - kw + 1
        assert hout > 0 and wout > 0, "spatial size too small for VALID conv"
        q = H * W
        cout_pad, K = w_k.shape
        assert K == kh * kw * cin

        # Flattened-index offset of each tap:
        #   x[c, h+dh, w+dw] == x_flat[c, (h*W + w) + dh*W + dw]
        taps = tuple(dh * W + dw for dh in range(kh) for dw in range(kw))

        # Wrap-safety: every KEPT output column q_keep = h*W + w (h < hout,
        # w < wout) must access only in-range flat pixels; roll wrap / garbage
        # may only land in columns the slice below discards.
        assert (hout - 1) * W + (wout - 1) + max(taps) < q, \
            "pltpu.roll wrap-around would leak into kept output columns"

        x_flat = x.reshape(cin, q)   # free reshape; no pad / transpose HLOs

        out_big = pl.pallas_call(
            functools.partial(_conv_gelu_kernel, taps=taps, q=q),
            out_shape=jax.ShapeDtypeStruct((cout_pad, q), jnp.float32),
            in_specs=[
                pl.BlockSpec(memory_space=pltpu.MemorySpace.VMEM),
                pl.BlockSpec(memory_space=pltpu.MemorySpace.VMEM),
                pl.BlockSpec(memory_space=pltpu.MemorySpace.VMEM),
            ],
            out_specs=pl.BlockSpec(memory_space=pltpu.MemorySpace.VMEM),
            cost_estimate=pl.CostEstimate(
                flops=2 * cout_pad * K * q,
                transcendentals=cout_pad * q,
                bytes_accessed=4 * (cin * q + cout_pad * K
                                    + cout_pad + cout_pad * q),
            ),
        )(x_flat, w_k, b_col)

        # "Big" layout keeps all W columns per output row; drop padded Cout
        # rows and the last kw-1 columns of each row (slice + reshape only).
        out = out_big[:cout, :hout * W].reshape(cout, hout, W)[:, :, :wout]
        return out.reshape(1, cout, hout, wout)

    return forward


def reference_forward(x, w, b):
    """Pure-JAX reference (same math) for a sanity check."""
    v2 = jax.lax.conv_general_dilated(
        x, w, window_strides=(1, 1), padding="VALID",
        dimension_numbers=("NCHW", "OIHW", "NCHW"))
    v2 = v2 + b[None, :, None, None]
    v3 = v2 * C0
    v6 = (v2 * v2 * v2) * C1
    v8 = (v2 + v6) * C2
    return v3 * (jnp.tanh(v8) + 1.0)


if __name__ == "__main__":
    key = jax.random.PRNGKey(0)
    kx, kw_, kb = jax.random.split(key, 3)

    Cin, Cout, KH, KW = 64, 31, 2, 2
    H = W = 16                                  # small VALID spatial size, Q = 256
    x = jax.random.normal(kx, (1, Cin, H, W), jnp.float32)
    fan_in = Cin * KH * KW
    w = jax.random.normal(kw_, (Cout, Cin, KH, KW), jnp.float32) * (fan_in ** -0.5)
    b = jax.random.normal(kb, (Cout,), jnp.float32) * 0.1

    # One-time parameter prep (kept off the per-call hot path).
    w_k, b_col = prepare_params(w, b)
    forward = make_forward(KH, KW, Cout)

    out = jax.block_until_ready(forward(x, w_k, b_col))
    ref = reference_forward(x, w, b)

    assert out.shape == (1, Cout, H - KH + 1, W - KW + 1)
    assert jnp.allclose(out, ref, atol=1e-3, rtol=1e-3), \
        float(jnp.max(jnp.abs(out - ref)))

    print("KERNEL_OK")
</pallas_src>

<mosaic_0001>
module attributes {stable_mosaic.version = 11 : i64} {
  func.func @_conv_gelu_kernel(%arg0: memref<64x256xf32, #tpu.memory_space<vmem>>, %arg1: memref<32x256xf32, #tpu.memory_space<vmem>>, %arg2: memref<32x1xf32, #tpu.memory_space<vmem>>, %arg3: memref<32x256xf32, #tpu.memory_space<vmem>>) attributes {dimension_semantics = [], scalar_prefetch = 0 : i64, scratch_operands = 0 : i64, tpu.core_type = #tpu.core_type<tc>} {
    %c0 = arith.constant 0 : index
    %c0_0 = arith.constant 0 : index
    %0 = vector.load %arg0[%c0, %c0_0] : memref<64x256xf32, #tpu.memory_space<vmem>>, vector<64x256xf32>
    %c255_i32 = arith.constant 255 : i32
    %1 = tpu.dynamic_rotate %0 by %c255_i32 dim 1 : vector<64x256xf32>, i32 -> vector<64x256xf32>
    %c240_i32 = arith.constant 240 : i32
    %2 = tpu.dynamic_rotate %0 by %c240_i32 dim 1 : vector<64x256xf32>, i32 -> vector<64x256xf32>
    %c239_i32 = arith.constant 239 : i32
    %3 = tpu.dynamic_rotate %0 by %c239_i32 dim 1 : vector<64x256xf32>, i32 -> vector<64x256xf32>
    %4 = tpu.concatenate %0, %1, %2, %3 in 0 : vector<64x256xf32>, vector<64x256xf32>, vector<64x256xf32>, vector<64x256xf32> -> vector<256x256xf32>
    %c0_1 = arith.constant 0 : index
    %c0_2 = arith.constant 0 : index
    %5 = vector.load %arg1[%c0_1, %c0_2] : memref<32x256xf32, #tpu.memory_space<vmem>>, vector<32x256xf32>
    %cst = arith.constant dense<0.000000e+00> : vector<32x256xf32>
    %6 = tpu.matmul %5, %4, %cst {dimension_numbers = #tpu.dot_dimension_numbers<[1], [0], [0], [1], [0, 0, 1, 1], [], []>} : vector<32x256xf32>, vector<256x256xf32>, vector<32x256xf32> -> vector<32x256xf32>
    %c0_3 = arith.constant 0 : index
    %c0_4 = arith.constant 0 : index
    %7 = vector.load %arg2[%c0_3, %c0_4] : memref<32x1xf32, #tpu.memory_space<vmem>>, vector<32x1xf32>
    %8 = vector.broadcast %7 : vector<32x1xf32> to vector<32x256xf32>
    %9 = arith.addf %6, %8 : vector<32x256xf32>
    %10 = arith.mulf %9, %9 : vector<32x256xf32>
    %cst_5 = arith.constant 0.0356774069 : f32
    %11 = vector.broadcast %cst_5 : f32 to vector<32x256xf32>
    %12 = arith.mulf %11, %10 : vector<32x256xf32>
    %cst_6 = arith.constant 0.797884583 : f32
    %13 = vector.broadcast %cst_6 : f32 to vector<32x256xf32>
    %14 = arith.addf %13, %12 : vector<32x256xf32>
    %15 = arith.mulf %9, %14 : vector<32x256xf32>
    %cst_7 = arith.constant 5.000000e-01 : f32
    %16 = vector.broadcast %cst_7 : f32 to vector<32x256xf32>
    %17 = arith.mulf %16, %9 : vector<32x256xf32>
    %18 = math.tanh %15 : vector<32x256xf32>
    %cst_8 = arith.constant 1.000000e+00 : f32
    %19 = vector.broadcast %cst_8 : f32 to vector<32x256xf32>
    %20 = arith.addf %18, %19 : vector<32x256xf32>
    %21 = arith.mulf %17, %20 : vector<32x256xf32>
    %c0_9 = arith.constant 0 : index
    %c0_10 = arith.constant 0 : index
    %22 = vector.load %arg3[%c0_9, %c0_10] : memref<32x256xf32, #tpu.memory_space<vmem>>, vector<32x256xf32>
    tpu.vector_store %arg3[%c0_9, %c0_10], %21 {strides = array<i32>} : memref<32x256xf32, #tpu.memory_space<vmem>>, vector<32x256xf32>,
    return
  }
}

</mosaic_0001>

<bundles_post_ra>
// kernel: forward.1
= control target key start
LH: loop header
LB: loop body
LE: loop exit
PB: predicated region body
PF: predicated region fallthrough
CT: control target
= control target key end

     0   :  { %s614_s28 = smov 127   ;;  %s616_s18 = smov 111   ;;  %v617_v34 = vmov 0   ;;  %v62_v39 = vlaneseq  ;;  %s878_s0 = inlined_call_operand.vmem [shape: f32[64,256], index: 0, kind: input, shape index: {}]   ;;  %s879_s1 = inlined_call_operand.vmem [shape: f32[32,256], index: 1, kind: input, shape index: {}]   ;;  %s880_s2 = inlined_call_operand.vmem [shape: f32[32,1], index: 2, kind: input, shape index: {}]   ;;  %s881_s3 = inlined_call_operand.vmem [shape: f32[32,256], index: 3, kind: output, shape index: {}]  }
   0x1   :  { %v18_v0 = vld [vmem:[%s878_s0 + $0x20] sm:$0xff]  ;;  %v20_v1 = vld [vmem:[%s878_s0 + $0x30] sm:$0xff]  ;;  %v19_v5 = vld [vmem:[%s878_s0 + $0x28] sm:$0xff]  ;;  %597 = vset.pattern.permute.xlu1 %v617_v34  ;;  %596 = vset.pattern.permute.xlu0 %v617_v34 }
   0x2   :  { %v14_v2 = vld [vmem:[%s878_s0] sm:$0xff]  ;;  %v647_v3 = vpack.i.bf16 %v20_v1, %v18_v0  ;;  %v16_v4 = vld [vmem:[%s878_s0 + $0x10] sm:$0xff]  ;;  %v21_v6 = vld [vmem:[%s878_s0 + $0x38] sm:$0xff]  ;;  %v382_v25 = vpack.c.bf16 %v20_v1, %v18_v0  ;;  %v717_v41 = vand.u32 127, %v62_v39 }
   0x3   :  { %v476_v7 = vpack.i.bf16 %v16_v4, %v14_v2  ;;  %v15_v8 = vld [vmem:[%s878_s0 + $0x8] sm:$0xff]  ;;  %v17_v9 = vld [vmem:[%s878_s0 + $0x18] sm:$0xff]  ;;  %v491_v10 = vpack.i.bf16 %v21_v6, %v19_v5  ;;  %v22_v14 = vld [vmem:[%s878_s0 + $0x40] sm:$0xff]  ;;  %v378_v18 = vpack.c.bf16 %v16_v4, %v14_v2  ;;  %v380_v19 = vpack.c.bf16 %v21_v6, %v19_v5 }
   0x4   :  { %487 = vrot.lane.b32.xlu1 %v647_v3, %s614_s28  ;;  %v481_v11 = vpack.i.bf16 %v17_v9, %v15_v8  ;;  %v23_v12 = vld [vmem:[%s878_s0 + $0x48] sm:$0xff]  ;;  %v25_v13 = vld [vmem:[%s878_s0 + $0x58] sm:$0xff]  ;;  %v24_v15 = vld [vmem:[%s878_s0 + $0x50] sm:$0xff]  ;;  %v376_v17 = vpack.c.bf16 %v17_v9, %v15_v8  ;;  %vm64_vm0 = vcmp.lt.s32.totalorder %v717_v41, 127  ;;  %vm113_vm1 = vcmp.lt.s32.totalorder %v717_v41, 112 }
   0x5   :  { %477 = vrot.lane.b32.xlu0 %v476_v7, %s614_s28  ;;  %v501_v16 = vpack.i.bf16 %v25_v13, %v23_v12  ;;  %v496_v20 = vpack.i.bf16 %v24_v15, %v22_v14  ;;  %v27_v21 = vld [vmem:[%s878_s0 + $0x68] sm:$0xff]  ;;  %v29_v22 = vld [vmem:[%s878_s0 + $0x78] sm:$0xff]  ;;  %v26_v23 = vld [vmem:[%s878_s0 + $0x60] sm:$0xff]  ;;  %v384_v27 = vpack.c.bf16 %v25_v13, %v23_v12  ;;  %v386_v29 = vpack.c.bf16 %v24_v15, %v22_v14 }
   0x6   :  { %v28_v24 = vld [vmem:[%s878_s0 + $0x70] sm:$0xff]  ;;  %377 = vmatprep.subr.bf16.mxu0 %v376_v17  ;;  %440 = vmatprep.subr.bf16.mxu1 %v376_v17  ;;  %v511_v26 = vpack.i.bf16 %v29_v22, %v27_v21  ;;  %v388_v30 = vpack.c.bf16 %v29_v22, %v27_v21  ;;  %s615_s0 = smov 112   ;;  %v180_v32 = vld [vmem:[%s879_s1 + $0x8] sm:$0xff]  ;;  %v187_v36 = vld [vmem:[%s880_s2] sm:$0xff]  ;;  %vm162_vm2 = vcmp.lt.s32.totalorder %v717_v41, 111 }
   0x7   :  { %379 = vmatpush1.bf16.msra.mxu0 %v378_v18  ;;  %456 = vmatpush1.bf16.msra.mxu1 %v378_v18  ;;  %v506_v28 = vpack.i.bf16 %v28_v24, %v26_v23  ;;  %v390_v31 = vpack.c.bf16 %v28_v24, %v26_v23  ;;  %v184_v33 = vld [vmem:[%s879_s1 + $0x28] sm:$0xff]  ;;  %v189_v37 = vld [vmem:[%s880_s2 + $0x10] sm:$0xff]  ;;  %v190_v38 = vld [vmem:[%s880_s2 + $0x18] sm:$0xff] }
   0x8   :  { %492 = vrot.lane.b32.xlu1 %v491_v10, %s614_s28  ;;  %381 = vmatprep.subr.bf16.mxu0 %v380_v19  ;;  %v188_v35 = vld [vmem:[%s880_s2 + $0x8] sm:$0xff]  ;;  %v182_v41 = vld [vmem:[%s879_s1 + $0x18] sm:$0xff] }
   0x9   :  { %482 = vrot.lane.b32.xlu0 %v481_v11, %s614_s28  ;;  %441 = vmatprep.subr.bf16.mxu1 %v380_v19 }
   0xa   :  { %275 = vmatprep.mubr.f32.mxu0 %v180_v32  ;;  %287 = vmatprep.mubr.f32.mxu1 %v184_v33 }
   0xb   :  { %383 = vmatpush1.bf16.msra.mxu0 %v382_v25  ;;  %457 = vmatpush1.bf16.msra.mxu1 %v382_v25 }
   0xc   :  { %502 = vrot.lane.b32.xlu1 %v501_v16, %s614_s28  ;;  %385 = vmatprep.subr.bf16.mxu0 %v384_v27 }
   0xd   :  { %497 = vrot.lane.b32.xlu0 %v496_v20, %s614_s28  ;;  %442 = vmatprep.subr.bf16.mxu1 %v384_v27 }
   0xf   :  { %387 = vmatpush1.bf16.msra.mxu0 %v386_v29  ;;  %458 = vmatpush1.bf16.msra.mxu1 %v386_v29 }
  0x10   :  { %512 = vrot.lane.b32.xlu1 %v511_v26, %s614_s28  ;;  %389 = vmatprep.subr.bf16.mxu0 %v388_v30 }
  0x11   :  { %507 = vrot.lane.b32.xlu0 %v506_v28, %s614_s28  ;;  %443 = vmatprep.subr.bf16.mxu1 %v388_v30 }
  0x13   :  { %391 = vmatpush1.bf16.msra.mxu0 %v390_v31  ;;  %459 = vmatpush1.bf16.msra.mxu1 %v390_v31 }
  0x14   :  { %522 = vrot.lane.b32.xlu1 %v481_v11, %s615_s0 }
  0x15   :  { %517 = vrot.lane.b32.xlu0 %v476_v7, %s615_s0 }
  0x18   :  { %532 = vrot.lane.b32.xlu1 %v491_v10, %s615_s0 }
  0x19   :  { %527 = vrot.lane.b32.xlu0 %v647_v3, %s615_s0 }
  0x1c   :  { %542 = vrot.lane.b32.xlu1 %v501_v16, %s615_s0 }
  0x1d   :  { %537 = vrot.lane.b32.xlu0 %v496_v20, %s615_s0 }
  0x20   :  { %552 = vrot.lane.b32.xlu1 %v511_v26, %s615_s0 }
  0x21   :  { %547 = vrot.lane.b32.xlu0 %v506_v28, %s615_s0 }
  0x24   :  { %562 = vrot.lane.b32.xlu1 %v481_v11, %s616_s18 }
  0x25   :  { %557 = vrot.lane.b32.xlu0 %v476_v7, %s616_s18 }
  0x28   :  { %572 = vrot.lane.b32.xlu1 %v491_v10, %s616_s18 }
  0x29   :  { %567 = vrot.lane.b32.xlu0 %v647_v3, %s616_s18 }
  0x2c   :  { %582 = vrot.lane.b32.xlu1 %v501_v16, %s616_s18 }
  0x2d   :  { %577 = vrot.lane.b32.xlu0 %v496_v20, %s616_s18 }
  0x30   :  { %592 = vrot.lane.b32.xlu1 %v511_v26, %s616_s18 }
  0x31   :  { %587 = vrot.lane.b32.xlu0 %v506_v28, %s616_s18 }
  0x34   :  { %198 = vperm.xlu1 %597, %v188_v35  }
  0x35   :  { %193 = vperm.xlu0 %596, %v187_v36  }
  0x38   :  { %203 = vperm.xlu1 %597, %v189_v37  }
  0x39   :  { %208 = vperm.xlu0 %596, %v190_v38  }
  0x76   :  { %v488_v40 = vpop.permute.xlu1 %487 }
  0x77   :  { %v478_v42 = vpop.permute.xlu0 %477  ;;  %v490_v43 = vunpack.i.h.bf16 %v488_v40  ;;  %v489_v44 = vunpack.i.l.bf16 %v488_v40 }
  0x78   :  { %v480_v49 = vunpack.i.h.bf16 %v478_v42  ;;  %v479_v50 = vunpack.i.l.bf16 %v478_v42 }
  0x7a   :  { %v493_v45 = vpop.permute.xlu1 %492 }
  0x7b   :  { %v495_v46 = vunpack.i.h.bf16 %v493_v45  ;;  %v494_v47 = vunpack.i.l.bf16 %v493_v45  ;;  %v483_v48 = vpop.permute.xlu0 %482 }
  0x7c   :  { %v485_v51 = vunpack.i.h.bf16 %v483_v48  ;;  %v484_v52 = vunpack.i.l.bf16 %v483_v48 }
  0x7d   :  { %v75_v53 = vsel %vm64_vm0, %v494_v47, %v489_v44  ;;  %v76_v54 = vsel %vm64_vm0, %v495_v46, %v490_v43  ;;  %v67_v4 = vsel %vm64_vm0, %v489_v44, %v494_v47  ;;  %v68_v5 = vsel %vm64_vm0, %v490_v43, %v495_v46 }
  0x7e   :  { %v73_v55 = vsel %vm64_vm0, %v484_v52, %v479_v50  ;;  %v74_v56 = vsel %vm64_vm0, %v485_v51, %v480_v49  ;;  %v65_v57 = vsel %vm64_vm0, %v479_v50, %v484_v52  ;;  %v66_v58 = vsel %vm64_vm0, %v480_v49, %v485_v51  ;;  %v503_v59 = vpop.permute.xlu1 %502 }
  0x7f   :  { %v392_v60 = vpack.c.bf16 %v74_v56, %v73_v55  ;;  %v394_v61 = vpack.c.bf16 %v66_v58, %v65_v57  ;;  %v505_v62 = vunpack.i.h.bf16 %v503_v59  ;;  %v504_v63 = vunpack.i.l.bf16 %v503_v59  ;;  %v498_v0 = vpop.permute.xlu0 %497 }
  0x80   :  { %v500_v1 = vunpack.i.h.bf16 %v498_v0  ;;  %v499_v2 = vunpack.i.l.bf16 %v498_v0  ;;  %v396_v3 = vpack.c.bf16 %v76_v54, %v75_v53  ;;  %v398_v15 = vpack.c.bf16 %v68_v5, %v67_v4 }
  0x81   :  { %393 = vmatprep.subr.bf16.mxu0 %v392_v60  ;;  %444 = vmatprep.subr.bf16.mxu1 %v392_v60 }
  0x82   :  { %395 = vmatpush1.bf16.msra.mxu0 %v394_v61  ;;  %460 = vmatpush1.bf16.msra.mxu1 %v394_v61  ;;  %v513_v6 = vpop.permute.xlu1 %512  ;;  %v77_v7 = vsel %vm64_vm0, %v504_v63, %v499_v2  ;;  %v78_v8 = vsel %vm64_vm0, %v505_v62, %v500_v1  ;;  %v69_v9 = vsel %vm64_vm0, %v499_v2, %v504_v63 }
  0x83   :  { %397 = vmatprep.subr.bf16.mxu0 %v396_v3  ;;  %445 = vmatprep.subr.bf16.mxu1 %v396_v3  ;;  %v515_v10 = vunpack.i.h.bf16 %v513_v6  ;;  %v514_v11 = vunpack.i.l.bf16 %v513_v6  ;;  %v508_v12 = vpop.permute.xlu0 %507  ;;  %v400_v13 = vpack.c.bf16 %v78_v8, %v77_v7  ;;  %v70_v14 = vsel %vm64_vm0, %v500_v1, %v505_v62 }
  0x84   :  { %v510_v16 = vunpack.i.h.bf16 %v508_v12  ;;  %v509_v17 = vunpack.i.l.bf16 %v508_v12  ;;  %v402_v18 = vpack.c.bf16 %v70_v14, %v69_v9 }
  0x86   :  { %399 = vmatpush1.bf16.msra.mxu0 %v398_v15  ;;  %461 = vmatpush1.bf16.msra.mxu1 %v398_v15  ;;  %v523_v19 = vpop.permute.xlu1 %522  ;;  %v79_v20 = vsel %vm64_vm0, %v514_v11, %v509_v17  ;;  %v80_v21 = vsel %vm64_vm0, %v515_v10, %v510_v16  ;;  %v71_v22 = vsel %vm64_vm0, %v509_v17, %v514_v11 }
  0x87   :  { %401 = vmatprep.subr.bf16.mxu0 %v400_v13  ;;  %446 = vmatprep.subr.bf16.mxu1 %v400_v13  ;;  %v525_v23 = vunpack.i.h.bf16 %v523_v19  ;;  %v524_v24 = vunpack.i.l.bf16 %v523_v19  ;;  %v518_v25 = vpop.permute.xlu0 %517  ;;  %v404_v26 = vpack.c.bf16 %v80_v21, %v79_v20  ;;  %v72_v27 = vsel %vm64_vm0, %v510_v16, %v515_v10 }
  0x88   :  { %v520_v28 = vunpack.i.h.bf16 %v518_v25  ;;  %v519_v29 = vunpack.i.l.bf16 %v518_v25  ;;  %v406_v30 = vpack.c.bf16 %v72_v27, %v71_v22 }
  0x8a   :  { %403 = vmatpush1.bf16.msra.mxu0 %v402_v18  ;;  %462 = vmatpush1.bf16.msra.mxu1 %v402_v18  ;;  %v533_v31 = vpop.permute.xlu1 %532  ;;  %v122_v32 = vsel %vm113_vm1, %v524_v24, %v519_v29  ;;  %v123_v33 = vsel %vm113_vm1, %v525_v23, %v520_v28  ;;  %v114_v34 = vsel %vm113_vm1, %v519_v29, %v524_v24 }
  0x8b   :  { %405 = vmatprep.subr.bf16.mxu0 %v404_v26  ;;  %447 = vmatprep.subr.bf16.mxu1 %v404_v26  ;;  %v535_v35 = vunpack.i.h.bf16 %v533_v31  ;;  %v534_v36 = vunpack.i.l.bf16 %v533_v31  ;;  %v528_v37 = vpop.permute.xlu0 %527  ;;  %v408_v38 = vpack.c.bf16 %v123_v33, %v122_v32  ;;  %v115_v39 = vsel %vm113_vm1, %v520_v28, %v525_v23 }
  0x8c   :  { %v530_v40 = vunpack.i.h.bf16 %v528_v37  ;;  %v529_v42 = vunpack.i.l.bf16 %v528_v37  ;;  %v410_v43 = vpack.c.bf16 %v115_v39, %v114_v34 }
  0x8e   :  { %407 = vmatpush1.bf16.msra.mxu0 %v406_v30  ;;  %463 = vmatpush1.bf16.msra.mxu1 %v406_v30  ;;  %v543_v44 = vpop.permute.xlu1 %542  ;;  %v124_v45 = vsel %vm113_vm1, %v534_v36, %v529_v42  ;;  %v125_v46 = vsel %vm113_vm1, %v535_v35, %v530_v40  ;;  %v116_v47 = vsel %vm113_vm1, %v529_v42, %v534_v36 }
  0x8f   :  { %409 = vmatprep.subr.bf16.mxu0 %v408_v38  ;;  %448 = vmatprep.subr.bf16.mxu1 %v408_v38  ;;  %v545_v48 = vunpack.i.h.bf16 %v543_v44  ;;  %v544_v49 = vunpack.i.l.bf16 %v543_v44  ;;  %v538_v50 = vpop.permute.xlu0 %537  ;;  %v412_v51 = vpack.c.bf16 %v125_v46, %v124_v45  ;;  %v117_v52 = vsel %vm113_vm1, %v530_v40, %v535_v35 }
  0x90   :  { %v540_v53 = vunpack.i.h.bf16 %v538_v50  ;;  %v539_v54 = vunpack.i.l.bf16 %v538_v50  ;;  %v414_v55 = vpack.c.bf16 %v117_v52, %v116_v47 }
  0x92   :  { %411 = vmatpush1.bf16.msra.mxu0 %v410_v43  ;;  %464 = vmatpush1.bf16.msra.mxu1 %v410_v43  ;;  %v553_v56 = vpop.permute.xlu1 %552  ;;  %v126_v57 = vsel %vm113_vm1, %v544_v49, %v539_v54  ;;  %v127_v58 = vsel %vm113_vm1, %v545_v48, %v540_v53  ;;  %v118_v59 = vsel %vm113_vm1, %v539_v54, %v544_v49 }
  0x93   :  { %413 = vmatprep.subr.bf16.mxu0 %v412_v51  ;;  %449 = vmatprep.subr.bf16.mxu1 %v412_v51  ;;  %v555_v60 = vunpack.i.h.bf16 %v553_v56  ;;  %v554_v61 = vunpack.i.l.bf16 %v553_v56  ;;  %v548_v62 = vpop.permute.xlu0 %547  ;;  %v416_v63 = vpack.c.bf16 %v127_v58, %v126_v57  ;;  %v119_v0 = vsel %vm113_vm1, %v540_v53, %v545_v48 }
  0x94   :  { %v550_v1 = vunpack.i.h.bf16 %v548_v62  ;;  %v549_v2 = vunpack.i.l.bf16 %v548_v62  ;;  %v418_v3 = vpack.c.bf16 %v119_v0, %v118_v59  ;;  %v179_v59 = vld [vmem:[%s879_s1] sm:$0xff]  ;;  %v181_v62 = vld [vmem:[%s879_s1 + $0x10] sm:$0xff] }
  0x96   :  { %415 = vmatpush1.bf16.msra.mxu0 %v414_v55  ;;  %465 = vmatpush1.bf16.msra.mxu1 %v414_v55  ;;  %v563_v4 = vpop.permute.xlu1 %562  ;;  %v128_v5 = vsel %vm113_vm1, %v554_v61, %v549_v2  ;;  %v129_v6 = vsel %vm113_vm1, %v555_v60, %v550_v1  ;;  %v120_v7 = vsel %vm113_vm1, %v549_v2, %v554_v61  ;;  %v186_v61 = vld [vmem:[%s879_s1 + $0x38] sm:$0xff] }
  0x97   :  { %417 = vmatprep.subr.bf16.mxu0 %v416_v63  ;;  %450 = vmatprep.subr.bf16.mxu1 %v416_v63  ;;  %v565_v8 = vunpack.i.h.bf16 %v563_v4  ;;  %v564_v9 = vunpack.i.l.bf16 %v563_v4  ;;  %v558_v10 = vpop.permute.xlu0 %557  ;;  %v420_v11 = vpack.c.bf16 %v129_v6, %v128_v5  ;;  %v121_v12 = vsel %vm113_vm1, %v550_v1, %v555_v60  ;;  %v183_v60 = vld [vmem:[%s879_s1 + $0x20] sm:$0xff]  ;;  %v185_v63 = vld [vmem:[%s879_s1 + $0x30] sm:$0xff] }
  0x98   :  { %v560_v13 = vunpack.i.h.bf16 %v558_v10  ;;  %v559_v14 = vunpack.i.l.bf16 %v558_v10  ;;  %v422_v15 = vpack.c.bf16 %v121_v12, %v120_v7 }
  0x9a   :  { %419 = vmatpush1.bf16.msra.mxu0 %v418_v3  ;;  %466 = vmatpush1.bf16.msra.mxu1 %v418_v3  ;;  %v573_v16 = vpop.permute.xlu1 %572  ;;  %v171_v17 = vsel %vm162_vm2, %v564_v9, %v559_v14  ;;  %v172_v18 = vsel %vm162_vm2, %v565_v8, %v560_v13  ;;  %v163_v19 = vsel %vm162_vm2, %v559_v14, %v564_v9 }
  0x9b   :  { %421 = vmatprep.subr.bf16.mxu0 %v420_v11  ;;  %451 = vmatprep.subr.bf16.mxu1 %v420_v11  ;;  %v575_v20 = vunpack.i.h.bf16 %v573_v16  ;;  %v574_v21 = vunpack.i.l.bf16 %v573_v16  ;;  %v568_v22 = vpop.permute.xlu0 %567  ;;  %v424_v23 = vpack.c.bf16 %v172_v18, %v171_v17  ;;  %v164_v24 = vsel %vm162_vm2, %v560_v13, %v565_v8 }
  0x9c   :  { %v570_v25 = vunpack.i.h.bf16 %v568_v22  ;;  %v569_v26 = vunpack.i.l.bf16 %v568_v22  ;;  %v426_v27 = vpack.c.bf16 %v164_v24, %v163_v19 }
  0x9e   :  { %423 = vmatpush1.bf16.msra.mxu0 %v422_v15  ;;  %467 = vmatpush1.bf16.msra.mxu1 %v422_v15  ;;  %v583_v28 = vpop.permute.xlu1 %582  ;;  %v173_v29 = vsel %vm162_vm2, %v574_v21, %v569_v26  ;;  %v174_v30 = vsel %vm162_vm2, %v575_v20, %v570_v25  ;;  %v165_v31 = vsel %vm162_vm2, %v569_v26, %v574_v21 }
  0x9f   :  { %425 = vmatprep.subr.bf16.mxu0 %v424_v23  ;;  %452 = vmatprep.subr.bf16.mxu1 %v424_v23  ;;  %v585_v32 = vunpack.i.h.bf16 %v583_v28  ;;  %v584_v33 = vunpack.i.l.bf16 %v583_v28  ;;  %v578_v34 = vpop.permute.xlu0 %577  ;;  %v428_v35 = vpack.c.bf16 %v174_v30, %v173_v29  ;;  %v166_v36 = vsel %vm162_vm2, %v570_v25, %v575_v20 }
  0xa0   :  { %v580_v37 = vunpack.i.h.bf16 %v578_v34  ;;  %v579_v38 = vunpack.i.l.bf16 %v578_v34  ;;  %v430_v39 = vpack.c.bf16 %v166_v36, %v165_v31 }
  0xa2   :  { %427 = vmatpush1.bf16.msra.mxu0 %v426_v27  ;;  %468 = vmatpush1.bf16.msra.mxu1 %v426_v27  ;;  %v593_v40 = vpop.permute.xlu1 %592  ;;  %v175_v42 = vsel %vm162_vm2, %v584_v33, %v579_v38  ;;  %v176_v43 = vsel %vm162_vm2, %v585_v32, %v580_v37  ;;  %v167_v44 = vsel %vm162_vm2, %v579_v38, %v584_v33 }
  0xa3   :  { %429 = vmatprep.subr.bf16.mxu0 %v428_v35  ;;  %453 = vmatprep.subr.bf16.mxu1 %v428_v35  ;;  %v595_v45 = vunpack.i.h.bf16 %v593_v40  ;;  %v594_v46 = vunpack.i.l.bf16 %v593_v40  ;;  %v588_v47 = vpop.permute.xlu0 %587  ;;  %v432_v48 = vpack.c.bf16 %v176_v43, %v175_v42  ;;  %v168_v49 = vsel %vm162_vm2, %v580_v37, %v585_v32 }
  0xa4   :  { %v590_v50 = vunpack.i.h.bf16 %v588_v47  ;;  %v589_v51 = vunpack.i.l.bf16 %v588_v47  ;;  %v434_v52 = vpack.c.bf16 %v168_v49, %v167_v44 }
  0xa6   :  { %431 = vmatpush1.bf16.msra.mxu0 %v430_v39  ;;  %469 = vmatpush1.bf16.msra.mxu1 %v430_v39  ;;  %v177_v53 = vsel %vm162_vm2, %v594_v46, %v589_v51  ;;  %v178_v54 = vsel %vm162_vm2, %v595_v45, %v590_v50  ;;  %v169_v56 = vsel %vm162_vm2, %v589_v51, %v594_v46 }
  0xa7   :  { %433 = vmatprep.subr.bf16.mxu0 %v432_v48  ;;  %454 = vmatprep.subr.bf16.mxu1 %v432_v48  ;;  %v436_v55 = vpack.c.bf16 %v178_v54, %v177_v53  ;;  %v170_v57 = vsel %vm162_vm2, %v590_v50, %v595_v45 }
  0xa8   :  { %v438_v58 = vpack.c.bf16 %v170_v57, %v169_v56 }
  0xaa   :  { %435 = vmatpush1.bf16.msra.mxu0 %v434_v52  ;;  %470 = vmatpush1.bf16.msra.mxu1 %v434_v52 }
  0xab   :  { %437 = vmatprep.subr.bf16.mxu0 %v436_v55  ;;  %455 = vmatprep.subr.bf16.mxu1 %v436_v55 }
  0xae   :  { %439 = vmatpush1.bf16.msra.mxu0 %v438_v58  ;;  %471 = vmatpush1.bf16.msra.mxu1 %v438_v58 }
  0xb1   :  { %276 = vmatmul.mubr.f32.vlgmr.msra.gmra.mrb[0].mxu0 %v179_v59  ;;  %288 = vmatmul.mubr.f32.vlgmr.msra.gmra.mrb[0].mxu1 %v183_v60 }
  0xb2   :  { %281 = vmatprep.mubr.f32.mxu0 %v182_v41  ;;  %293 = vmatprep.mubr.f32.mxu1 %v186_v61 }
  0xb3   :  { %v199_v0 = vpop.permute.xlu1 %198 }
  0xb4   :  { %v194_v1 = vpop.permute.xlu0 %193 }
  0xb5   :  { %282 = vmatmul.mubr.f32.gmra.mrb[2].mxu0 %v181_v62  ;;  %294 = vmatmul.mubr.f32.gmra.mrb[2].mxu1 %v185_v63 }
  0xb7   :  { %v204_v2 = vpop.permute.xlu1 %203 }
  0xb8   :  { %v209_v13 = vpop.permute.xlu0 %208 }
 0x184   :  { %v277_v3 = vpop.f32.mrb[0].mxu0  ;;  %v289_v4 = vpop.f32.mrb[0].mxu1 }
 0x185   :  { %v278_v5 = vadd.f32 %v277_v3, %v194_v1  ;;  %v290_v6 = vadd.f32 %v289_v4, %v204_v2  ;;  %v279_v7 = vpop.f32.mrb[1].mxu0  ;;  %v291_v8 = vpop.f32.mrb[1].mxu1 }
 0x186   :  { %v280_v9 = vadd.f32 %v279_v7, %v194_v1  ;;  %v836_v10 = vadd.f32 %v291_v8, %v204_v2 }
 0x187   :  { %v300_v11 = vmul.f32 %v278_v5, %v278_v5  ;;  %v304_v12 = vmul.f32 %v290_v6, %v290_v6  ;;  %v332_v55 = vmul.f32 0.5, %v278_v5  ;;  %v336_v58 = vmul.f32 0.5, %v290_v6 }
 0x188   :  { %v301_v14 = vmul.f32 %v280_v9, %v280_v9  ;;  %v305_v15 = vmul.f32 %v836_v10, %v836_v10  ;;  %v283_v16 = vpop.f32.mrb[2].mxu0  ;;  %v295_v17 = vpop.f32.mrb[2].mxu1  ;;  %v333_v61 = vmul.f32 0.5, %v280_v9  ;;  %v337_v1 = vmul.f32 0.5, %v836_v10 }
 0x189   :  { %v308_v18 = vmul.f32 0.035677407, %v300_v11  ;;  %v312_v19 = vmul.f32 0.035677407, %v304_v12  ;;  %v284_v20 = vadd.f32 %v283_v16, %v199_v0  ;;  %v840_v21 = vadd.f32 %v295_v17, %v209_v13  ;;  %v285_v22 = vpop.f32.mrb[3].mxu0  ;;  %v297_v23 = vpop.f32.mrb[3].mxu1 }
 0x18a   :  { %v309_v24 = vmul.f32 0.035677407, %v301_v14  ;;  %v313_v25 = vmul.f32 0.035677407, %v305_v15  ;;  %v286_v26 = vadd.f32 %v285_v22, %v199_v0  ;;  %v842_v30 = vadd.f32 %v297_v23, %v209_v13 }
 0x18b   :  { %v316_v27 = vadd.f32 0.7978846, %v308_v18  ;;  %v320_v28 = vadd.f32 0.7978846, %v312_v19  ;;  %v302_v29 = vmul.f32 %v284_v20, %v284_v20  ;;  %v306_v33 = vmul.f32 %v840_v21, %v840_v21 }
 0x18c   :  { %v317_v31 = vadd.f32 0.7978846, %v309_v24  ;;  %v321_v32 = vadd.f32 0.7978846, %v313_v25  ;;  %v303_v37 = vmul.f32 %v286_v26, %v286_v26  ;;  %v307_v44 = vmul.f32 %v842_v30, %v842_v30 }
 0x18d   :  { %v324_v34 = vmul.f32 %v316_v27, %v278_v5  ;;  %v328_v35 = vmul.f32 %v320_v28, %v290_v6  ;;  %v310_v36 = vmul.f32 0.035677407, %v302_v29  ;;  %v314_v40 = vmul.f32 0.035677407, %v306_v33 }
 0x18e   :  { %v325_v38 = vmul.f32 %v317_v31, %v280_v9  ;;  %v329_v39 = vmul.f32 %v321_v32, %v836_v10  ;;  %v311_v43 = vmul.f32 0.035677407, %v303_v37  ;;  %v315_v48 = vmul.f32 0.035677407, %v307_v44 }
 0x18f   :  { %598 = vtanh.f32 %v324_v34  ;;  %v318_v42 = vadd.f32 0.7978846, %v310_v36  ;;  %v322_v45 = vadd.f32 0.7978846, %v314_v40  ;;  %v334_v5 = vmul.f32 0.5, %v284_v20 }
 0x190   :  { %600 = vtanh.f32 %v328_v35  ;;  %v319_v47 = vadd.f32 0.7978846, %v311_v43  ;;  %v323_v51 = vadd.f32 0.7978846, %v315_v48  ;;  %v338_v9 = vmul.f32 0.5, %v840_v21 }
 0x191   :  { %602 = vtanh.f32 %v325_v38  ;;  %v326_v46 = vmul.f32 %v318_v42, %v284_v20  ;;  %v330_v49 = vmul.f32 %v322_v45, %v840_v21  ;;  %v335_v12 = vmul.f32 0.5, %v286_v26 }
 0x192   :  { %604 = vtanh.f32 %v329_v39  ;;  %v327_v50 = vmul.f32 %v319_v47, %v286_v26  ;;  %v331_v52 = vmul.f32 %v323_v51, %v842_v30  ;;  %v339_v17 = vmul.f32 0.5, %v842_v30 }
 0x193   :  { %606 = vtanh.f32 %v326_v46 }
 0x194   :  { %608 = vtanh.f32 %v330_v49 }
 0x195   :  { %610 = vtanh.f32 %v327_v50 }
 0x196   :  { %612 = vtanh.f32 %v331_v52 }
 0x199   :  { %v599_v53 = vpop.eup %598 }
 0x19a   :  { %v601_v54 = vpop.eup %600  ;;  %v348_v56 = vadd.f32 1.0, %v599_v53 }
 0x19b   :  { %v603_v57 = vpop.eup %602  ;;  %v352_v59 = vadd.f32 1.0, %v601_v54 }
 0x19c   :  { %v605_v60 = vpop.eup %604  ;;  %v356_v41 = vmul.f32 %v348_v56, %v332_v55  ;;  %v349_v62 = vadd.f32 1.0, %v603_v57 }
 0x19d   :  { %v607_v63 = vpop.eup %606  ;;  %v360_v0 = vmul.f32 %v352_v59, %v336_v58  ;;  %v353_v2 = vadd.f32 1.0, %v605_v60 }
 0x19e   :  { %v609_v3 = vpop.eup %608  ;;  %364 = vst [vmem:[%s881_s3] sm:$0xff] %v356_v41  ;;  %v357_v4 = vmul.f32 %v349_v62, %v333_v61  ;;  %v350_v7 = vadd.f32 1.0, %v607_v63 }
 0x19f   :  { %v611_v8 = vpop.eup %610  ;;  %368 = vst [vmem:[%s881_s3 + $0x20] sm:$0xff] %v360_v0  ;;  %v361_v6 = vmul.f32 %v353_v2, %v337_v1  ;;  %v354_v11 = vadd.f32 1.0, %v609_v3 }
 0x1a0   :  { %365 = vst [vmem:[%s881_s3 + $0x8] sm:$0xff] %v357_v4  ;;  %v358_v10 = vmul.f32 %v350_v7, %v334_v5  ;;  %v351_v13 = vadd.f32 1.0, %v611_v8  ;;  %v613_v14 = vpop.eup %612 }
 0x1a1   :  { %369 = vst [vmem:[%s881_s3 + $0x28] sm:$0xff] %v361_v6  ;;  %v362_v15 = vmul.f32 %v354_v11, %v338_v9  ;;  %v355_v18 = vadd.f32 1.0, %v613_v14 }
 0x1a2   :  { %366 = vst [vmem:[%s881_s3 + $0x10] sm:$0xff] %v358_v10  ;;  %v359_v16 = vmul.f32 %v351_v13, %v335_v12 }
 0x1a3   :  { %370 = vst [vmem:[%s881_s3 + $0x30] sm:$0xff] %v362_v15  ;;  %v363_v19 = vmul.f32 %v355_v18, %v339_v17 }
 0x1a4   :  { %367 = vst [vmem:[%s881_s3 + $0x18] sm:$0xff] %v359_v16 }
 0x1a5   :  { %371 = vst [vmem:[%s881_s3 + $0x38] sm:$0xff] %v363_v19 }

</bundles_post_ra>
